<compile_context>
chip_gen: v7x
topology: tpu7x:2x2x1
jax: 0.10.0
libtpu: 0.0.40
codegen_flags: <defaults>
</compile_context>

<pallas_src>
import jax
import jax.numpy as jnp
from jax import lax
from jax.experimental import pallas as pl
from jax.experimental.pallas import tpu as pltpu


def _cdiv(a, b):
    return (a + b - 1) // b


def _round_up(a, b):
    return _cdiv(a, b) * b


def _tpu_vmem_capacity_bytes():
    """Best-effort per-core VMEM query; conservative 64 MiB fallback."""
    try:
        cap = int(pltpu.get_tpu_info().vmem_capacity_bytes)
        if cap > 0:
            return cap
    except Exception:
        pass
    return 64 * 2**20


def _make_focal_kernel(*, gamma, alpha_scalar, has_alpha_vec, total_n, tile_n):
    g = float(gamma)
    g_int = int(g) if (g.is_integer() and 0.0 <= g <= 8.0) else None

    def kernel(*refs):
        if has_alpha_vec:
            logits_ref, targets_ref, alpha_ref, out_ref = refs
        else:
            logits_ref, targets_ref, out_ref = refs
            alpha_ref = None

        p = pl.program_id(0)
        t = pl.program_id(1)
        nt = pl.num_programs(1)

        @pl.when(t == 0)
        def _():
            out_ref[...] = jnp.zeros_like(out_ref)

        logits = logits_ref[...].astype(jnp.float32)            # (TN, Cpad)
        tgt = targets_ref[...]                                   # (TN, 1) int32

        # Numerically-stable log-softmax pieces. We never materialize the full
        # (TN, C) log_probs tensor: one-hot-gather the target's *shifted*
        # logit, then subtract the per-row lse.  Padded class lanes hold a
        # large negative value: exp -> 0, max unaffected, one-hot never hits.
        m = jnp.max(logits, axis=-1, keepdims=True)              # (TN, 1)
        shifted = logits - m                                      # (TN, Cpad)
        lse = jnp.log(jnp.sum(jnp.exp(shifted), axis=-1, keepdims=True))  # (TN,1)

        col = lax.broadcasted_iota(jnp.int32, logits.shape, 1)
        onehot = col == tgt                                        # (TN, Cpad)
        tgt_shifted = jnp.sum(jnp.where(onehot, shifted, 0.0),
                              axis=-1, keepdims=True)              # (TN, 1)

        ce = lse - tgt_shifted                                     # per-sample CE
        pt = jnp.exp(-ce)
        w = jnp.maximum(1.0 - pt, 0.0)                             # clamp fp rounding
        if g_int is not None:
            if g_int == 0:
                wg = jnp.ones_like(w)
            else:
                wg = w
                for _ in range(g_int - 1):
                    wg = wg * w
        else:
            wg = w ** g
        focal = wg * ce                                            # (TN, 1)

        if has_alpha_vec:
            alpha_row = alpha_ref[...].astype(jnp.float32)         # (1, Cpad)
            alpha_t = jnp.sum(jnp.where(onehot, alpha_row, 0.0),
                              axis=-1, keepdims=True)
            focal = alpha_t * focal
        elif alpha_scalar is not None:
            focal = float(alpha_scalar) * focal

        # Mask padded tail rows (keeps arbitrary N correct).
        row0 = (p * nt + t) * tile_n
        row = row0 + lax.broadcasted_iota(jnp.int32, (tile_n, 1), 0)
        focal = jnp.where(row < total_n, focal, 0.0)

        # Broadcast-add the tile's partial sum over the whole resident block
        # (lane-dense vreg add; [0, 0] of each partial block holds the sum).
        out_ref[...] += jnp.sum(focal)

    return kernel


def focal_loss(logits, targets, *, gamma=2.0, alpha=None, reduction="mean",
               tile_n=None, num_partials=None):
    """Pallas FocalLoss. logits: (N, C) f32/bf16, targets: (N,) int."""
    if reduction not in ("mean", "sum"):
        # TODO(synk): reduction='none' (per-sample output) needs a non-reducing
        # kernel variant; only 'mean'/'sum' are implemented here.
        raise NotImplementedError("only reduction='mean'/'sum' implemented")

    N, C = logits.shape
    itemsize = jnp.dtype(logits.dtype).itemsize

    has_alpha_vec = (alpha is not None) and not isinstance(alpha, (float, int))
    alpha_scalar = alpha if isinstance(alpha, (float, int)) else None

    # ---- generation-aware VMEM budgeting -----------------------------------
    vmem_cap = _tpu_vmem_capacity_bytes()
    if vmem_cap >= 100 * 2**20:        # v5e / v6e: 128 MiB VMEM, 1 TensorCore
        db_budget = 56 * 2**20         # double-buffered input budget
        vmem_limit_cap = 96 * 2**20
        default_partials = 1
    else:                              # v7x: 64 MiB VMEM per TC, 2 TCs
        db_budget = 24 * 2**20
        vmem_limit_cap = 48 * 2**20
        default_partials = 2
    num_partials = default_partials if num_partials is None else int(num_partials)
    num_partials = max(1, num_partials)

    # ---- class dim padded to a lane-dense multiple of 128 -------------------
    C_pad = max(128, _round_up(C, 128))
    if C_pad != C:
        logits = jnp.pad(logits, ((0, 0), (0, C_pad - C)), constant_values=-1e30)

    # ---- tile sizing: biggest row tile that fits the double-buffer budget ---
    # Per-row bytes per buffer: lane-dense logits row + the (rows, 1) int32
    # targets block whose lane dim pads to 128 in VMEM (rows * 128 * 4).
    row_bytes = C_pad * itemsize + 128 * 4
    max_rows = max(16, (db_budget // (2 * row_bytes)) // 16 * 16)
    rows = min(max_rows, _round_up(N, 16))
    if tile_n is not None:             # explicit override (tests / tuning)
        rows = min(rows, max(16, _round_up(int(tile_n), 16)))

    # Never give a partial a tile that is 100% padding.
    num_partials = min(num_partials, _cdiv(N, rows))
    tiles_per_partial = _cdiv(N, rows * num_partials)
    n_pad = rows * num_partials * tiles_per_partial

    targets2d = targets.astype(jnp.int32).reshape(N, 1)
    if n_pad != N:
        logits_p = jnp.pad(logits, ((0, n_pad - N), (0, 0)))
        targets_p = jnp.pad(targets2d, ((0, n_pad - N), (0, 0)))
    else:
        logits_p, targets_p = logits, targets2d

    kernel = _make_focal_kernel(gamma=gamma, alpha_scalar=alpha_scalar,
                                has_alpha_vec=has_alpha_vec,
                                total_n=int(N), tile_n=rows)

    T = tiles_per_partial
    in_specs = [
        pl.BlockSpec((rows, C_pad), lambda p, t: (p * T + t, 0)),
        pl.BlockSpec((rows, 1), lambda p, t: (p * T + t, 0)),
    ]
    args = [logits_p, targets_p]
    if has_alpha_vec:
        alpha_arr = jnp.asarray(alpha, jnp.float32).reshape(1, C)
        if C_pad != C:
            alpha_arr = jnp.pad(alpha_arr, ((0, 0), (0, C_pad - C)))
        in_specs.append(pl.BlockSpec((1, C_pad), lambda p, t: (0, 0)))  # resident
        args.append(alpha_arr)

    # VMEM budget: double-buffered logits + (lane-padded) targets blocks,
    # resident alpha and output blocks, plus ~1 MiB slack; 1.5x headroom,
    # capped per generation.
    need = 2 * rows * row_bytes + C_pad * 4 + 2 * 8 * 128 * 4 + (1 << 20)
    vmem_limit = int(min(vmem_limit_cap, max(need + need // 2, 16 * 2**20)))

    out = pl.pallas_call(
        kernel,
        out_shape=jax.ShapeDtypeStruct((num_partials * 8, 128), jnp.float32),
        grid_spec=pltpu.PrefetchScalarGridSpec(
            num_scalar_prefetch=0,
            grid=(num_partials, tiles_per_partial),
            in_specs=in_specs,
            out_specs=pl.BlockSpec((8, 128), lambda p, t: (p, 0)),
        ),
        compiler_params=pltpu.CompilerParams(
            dimension_semantics=("parallel", "arbitrary"),
            vmem_limit_bytes=vmem_limit,
        ),
    )(*args)

    total = jnp.sum(out[::8, 0])          # one scalar per partial block
    if reduction == "sum":
        return total
    return total / jnp.float32(N)         # reduction='mean'


def _focal_loss_ref(logits, targets, gamma=2.0, alpha=None):
    # Pure-JAX reference matching the torch module semantics (mean reduction).
    logits = logits.astype(jnp.float32)
    logp = jax.nn.log_softmax(logits, axis=-1)
    ce = -jnp.take_along_axis(logp, targets[:, None].astype(jnp.int32), axis=-1)[:, 0]
    pt = jnp.exp(-ce)
    fl = (1.0 - pt) ** gamma * ce
    if alpha is not None:
        if isinstance(alpha, (float, int)):
            fl = alpha * fl
        else:
            fl = jnp.asarray(alpha, jnp.float32)[targets] * fl
    return jnp.mean(fl)


if __name__ == "__main__":
    key = jax.random.PRNGKey(0)
    k1, k2, k3, k4, k5 = jax.random.split(key, 5)

    # Case 1: module defaults (gamma=2.0, alpha=None, reduction='mean'), f32.
    N, C = 16, 128
    logits = jax.random.normal(k1, (N, C), dtype=jnp.float32)
    targets = jax.random.randint(k2, (N,), 0, C, dtype=jnp.int32)
    loss = jax.block_until_ready(focal_loss(logits, targets, gamma=2.0))
    ref = _focal_loss_ref(logits, targets, gamma=2.0)
    assert jnp.allclose(loss, ref, atol=1e-5, rtol=1e-5), (loss, ref)

    # Case 2: non-multiple batch + non-128 class count (class-dim padding,
    # multi-tile with tail masking via explicit tile override).
    N2, C2 = 100, 96
    logits2 = jax.random.normal(k3, (N2, C2), dtype=jnp.float32)
    targets2 = jax.random.randint(k4, (N2,), 0, C2, dtype=jnp.int32)
    loss2 = jax.block_until_ready(focal_loss(logits2, targets2, tile_n=32))
    ref2 = _focal_loss_ref(logits2, targets2)
    assert jnp.allclose(loss2, ref2, atol=1e-5, rtol=1e-5), (loss2, ref2)

    # Case 2b: same inputs with auto (VMEM-max) tiling and sum reduction.
    loss2b = jax.block_until_ready(focal_loss(logits2, targets2, reduction="sum"))
    ref2b = _focal_loss_ref(logits2, targets2) * N2
    assert jnp.allclose(loss2b, ref2b, atol=1e-4, rtol=1e-5), (loss2b, ref2b)

    # Case 3: bf16 logits (half the HBM traffic; in-kernel math stays f32).
    logits_bf16 = logits.astype(jnp.bfloat16)
    loss3 = jax.block_until_ready(focal_loss(logits_bf16, targets))
    ref3 = _focal_loss_ref(logits_bf16, targets)
    assert jnp.allclose(loss3, ref3, atol=1e-5, rtol=1e-5), (loss3, ref3)

    # Case 4: per-class alpha vector (resident (1, C) input) and scalar alpha.
    alpha_vec = jax.random.uniform(k5, (C,), dtype=jnp.float32, minval=0.25, maxval=1.0)
    loss4 = jax.block_until_ready(focal_loss(logits, targets, alpha=alpha_vec))
    ref4 = _focal_loss_ref(logits, targets, alpha=alpha_vec)
    assert jnp.allclose(loss4, ref4, atol=1e-5, rtol=1e-5), (loss4, ref4)

    loss5 = jax.block_until_ready(focal_loss(logits, targets, alpha=0.5))
    ref5 = _focal_loss_ref(logits, targets, alpha=0.5)
    assert jnp.allclose(loss5, ref5, atol=1e-5, rtol=1e-5), (loss5, ref5)

    print("KERNEL_OK")
</pallas_src>

<mosaic_0001>
module attributes {stable_mosaic.version = 11 : i64} {
  func.func @kernel(%arg0: i32, %arg1: i32, %arg2: memref<16x128xf32, #tpu.memory_space<vmem>>, %arg3: memref<16x1xi32, #tpu.memory_space<vmem>>, %arg4: memref<8x128xf32, #tpu.memory_space<vmem>>) attributes {dimension_semantics = [#tpu.dimension_semantics<parallel>, #tpu.dimension_semantics<arbitrary>], iteration_bounds = array<i64: 1, 1>, scalar_prefetch = 0 : i64, scratch_operands = 0 : i64, tpu.core_type = #tpu.core_type<tc>, window_params = [{transform_indices = @transform_0, window_bounds = array<i64: 16, 128>}, {transform_indices = @transform_1, window_bounds = array<i64: 16, 1>}, {transform_indices = @transform_2, window_bounds = array<i64: 8, 128>}]} {
    %c0_i32 = arith.constant 0 : i32
    %0 = arith.cmpi eq, %arg1, %c0_i32 : i32
    %1 = arith.extui %0 : i1 to i32
    %c0_i32_0 = arith.constant 0 : i32
    %2 = arith.cmpi ne, %1, %c0_i32_0 : i32
    scf.if %2 {
      %cst_17 = arith.constant 0.000000e+00 : f32
      %48 = vector.broadcast %cst_17 : f32 to vector<8x128xf32>
      %c0_18 = arith.constant 0 : index
      %c0_19 = arith.constant 0 : index
      %49 = vector.load %arg4[%c0_18, %c0_19] : memref<8x128xf32, #tpu.memory_space<vmem>>, vector<8x128xf32>
      tpu.vector_store %arg4[%c0_18, %c0_19], %48 {strides = array<i32>} : memref<8x128xf32, #tpu.memory_space<vmem>>, vector<8x128xf32>,
    } else {
    }
    %c0 = arith.constant 0 : index
    %c0_1 = arith.constant 0 : index
    %3 = vector.load %arg2[%c0, %c0_1] : memref<16x128xf32, #tpu.memory_space<vmem>>, vector<16x128xf32>
    %c0_2 = arith.constant 0 : index
    %c0_3 = arith.constant 0 : index
    %4 = vector.load %arg3[%c0_2, %c0_3] : memref<16x1xi32, #tpu.memory_space<vmem>>, vector<16x1xi32>
    %cst = arith.constant dense<0xFF800000> : vector<16xf32>
    %5 = vector.multi_reduction <maximumf>, %3, %cst [1] : vector<16x128xf32> to vector<16xf32>
    %6 = vector.shape_cast %5 : vector<16xf32> to vector<16x1xf32>
    %7 = vector.broadcast %6 : vector<16x1xf32> to vector<16x128xf32>
    %8 = arith.subf %3, %7 : vector<16x128xf32>
    %9 = math.exp %8 : vector<16x128xf32>
    %cst_4 = arith.constant dense<0.000000e+00> : vector<16xf32>
    %10 = vector.multi_reduction <add>, %9, %cst_4 [1] : vector<16x128xf32> to vector<16xf32>
    %11 = vector.shape_cast %10 : vector<16xf32> to vector<16x1xf32>
    %12 = math.log %11 : vector<16x1xf32>
    %13 = tpu.iota {dimensions = array<i32: 1>} : vector<16x128xi32>
    %14 = vector.broadcast %4 : vector<16x1xi32> to vector<16x128xi32>
    %15 = arith.cmpi eq, %13, %14 : vector<16x128xi32>
    %cst_5 = arith.constant 0.000000e+00 : f32
    %16 = vector.broadcast %cst_5 : f32 to vector<16x128xf32>
    %17 = arith.select %15, %8, %16 : vector<16x128xi1>, vector<16x128xf32>
    %cst_6 = arith.constant dense<0.000000e+00> : vector<16xf32>
    %18 = vector.multi_reduction <add>, %17, %cst_6 [1] : vector<16x128xf32> to vector<16xf32>
    %19 = vector.shape_cast %18 : vector<16xf32> to vector<16x1xf32>
    %20 = arith.subf %12, %19 : vector<16x1xf32>
    %cst_7 = arith.constant 0.000000e+00 : f32
    %21 = vector.broadcast %cst_7 : f32 to vector<16x1xf32>
    %22 = arith.subf %21, %20 : vector<16x1xf32>
    %23 = math.exp %22 : vector<16x1xf32>
    %cst_8 = arith.constant 1.000000e+00 : f32
    %24 = vector.broadcast %cst_8 : f32 to vector<16x1xf32>
    %25 = arith.subf %24, %23 : vector<16x1xf32>
    %cst_9 = arith.constant 0.000000e+00 : f32
    %26 = vector.broadcast %cst_9 : f32 to vector<16x1xf32>
    %27 = arith.maximumf %25, %26 : vector<16x1xf32>
    %28 = arith.mulf %27, %27 : vector<16x1xf32>
    %29 = arith.mulf %28, %20 : vector<16x1xf32>
    %c1_i32 = arith.constant 1 : i32
    %30 = arith.muli %arg0, %c1_i32 : i32
    %31 = arith.addi %30, %arg1 : i32
    %c16_i32 = arith.constant 16 : i32
    %32 = arith.muli %31, %c16_i32 : i32
    %33 = tpu.iota {dimensions = array<i32: 0>} : vector<16x1xi32>
    %34 = vector.broadcast %32 : i32 to vector<16x1xi32>
    %35 = arith.addi %34, %33 : vector<16x1xi32>
    %c16_i32_10 = arith.constant 16 : i32
    %36 = vector.broadcast %c16_i32_10 : i32 to vector<16x1xi32>
    %37 = arith.cmpi slt, %35, %36 : vector<16x1xi32>
    %cst_11 = arith.constant 0.000000e+00 : f32
    %38 = vector.broadcast %cst_11 : f32 to vector<16x1xf32>
    %39 = arith.select %37, %29, %38 : vector<16x1xi1>, vector<16x1xf32>
    %c0_12 = arith.constant 0 : index
    %c0_13 = arith.constant 0 : index
    %40 = vector.load %arg4[%c0_12, %c0_13] : memref<8x128xf32, #tpu.memory_space<vmem>>, vector<8x128xf32>
    %41 = vector.shape_cast %39 : vector<16x1xf32> to vector<1x16x1xf32>
    %cst_14 = arith.constant dense<0.000000e+00> : vector<1xf32>
    %42 = vector.multi_reduction <add>, %41, %cst_14 [1, 2] : vector<1x16x1xf32> to vector<1xf32>
    %43 = vector.shape_cast %42 : vector<1xf32> to vector<1x1x1xf32>
    %44 = vector.extract %43[0, 0, 0] : f32 from vector<1x1x1xf32>
    %45 = vector.broadcast %44 : f32 to vector<8x128xf32>
    %46 = arith.addf %40, %45 : vector<8x128xf32>
    %c0_15 = arith.constant 0 : index
    %c0_16 = arith.constant 0 : index
    %47 = vector.load %arg4[%c0_15, %c0_16] : memref<8x128xf32, #tpu.memory_space<vmem>>, vector<8x128xf32>
    tpu.vector_store %arg4[%c0_15, %c0_16], %46 {strides = array<i32>} : memref<8x128xf32, #tpu.memory_space<vmem>>, vector<8x128xf32>,
    return
  }
  func.func @transform_0(%arg0: i32, %arg1: i32) -> (i32, i32) {
    %c1_i32 = arith.constant 1 : i32
    %0 = arith.muli %arg0, %c1_i32 : i32
    %1 = arith.addi %0, %arg1 : i32
    %c0_i32 = arith.constant 0 : i32
    %c0_i32_0 = arith.constant 0 : i32
    return %1, %c0_i32 : i32, i32
  }
  func.func @transform_1(%arg0: i32, %arg1: i32) -> (i32, i32) {
    %c1_i32 = arith.constant 1 : i32
    %0 = arith.muli %arg0, %c1_i32 : i32
    %1 = arith.addi %0, %arg1 : i32
    %c0_i32 = arith.constant 0 : i32
    %c0_i32_0 = arith.constant 0 : i32
    return %1, %c0_i32 : i32, i32
  }
  func.func @transform_2(%arg0: i32, %arg1: i32) -> (i32, i32) {
    %c0_i32 = arith.constant 0 : i32
    %c0_i32_0 = arith.constant 0 : i32
    return %arg0, %c0_i32 : i32, i32
  }
}

</mosaic_0001>

<bundles_post_ra>
// kernel: tpu_custom_call.1
= control target key start
LH: loop header
LB: loop body
LE: loop exit
PB: predicated region body
PF: predicated region fallthrough
CT: control target
= control target key end

     0   :  { %v213_v2 = vmov 0   ;;  %s254_s0 = inlined_call_operand.vmem [shape: f32[16,128], index: 0, kind: input, shape index: {}]   ;;  %s255_s1 = inlined_call_operand.vmem [shape: s32[16,1], index: 1, kind: input, shape index: {}]   ;;  %s256_s2 = inlined_call_operand.hbm [shape: f32[8,128], index: 2, kind: output, shape index: {}]  }
   0x1   :  { %v61_v0 = vld [vmem:[%s254_s0] sm:$0xff]  ;;  %175 = vset.pattern.permute.xlu1 %v213_v2 }
   0x2   :  { %v63_v1 = vld [vmem:[%s255_s1] sm:$0xff]  ;;  %65 = vmax.xlane.f32.xlu0 %v61_v0 }
   0x3   :  { %7 = vsyncpa [#allocation3], 0  ;;  %v62_v3 = vld [vmem:[%s254_s0 + $0x8] sm:$0xff]  ;;  %86 = vperm.xlu1 %175, %v63_v1   ;;  %176 = vset.pattern.permute.xlu0 %v213_v2  ;;  %v83_v11 = vlaneseq  ;;  %vm128_vm2 = vcmask 7168   ;;  %s214_s0 = smov [#allocation2]  }
   0x4   :  { %v64_v4 = vld [vmem:[%s255_s1 + $0x8] sm:$0xff]  ;;  %s150_s1 = sshll.u32 %s214_s0, 4  ;;  %s151_s1 = int_to_ptr.vmem [resolvable:$true] %s150_s1 }
   0x5   :  { %v84_v13 = vand.u32 127, %v83_v11  ;;  %s189_s18 = scalar_lea.vmem %s151_s1, 128  ;;  %p194_p1 = scmp.lt.s32.totalorder %s151_s1, %s151_s1 }
   0x6   :  { %67 = vmax.xlane.f32.xlu0 %v62_v3  ;;  %p190_p0 = scmp.ne.s32.totalorder %s151_s1, %s189_s18  ;;  %p195_p2 = scmp.lt.s32.totalorder %s189_s18, %s189_s18 }
   0x7   :  { %89 = vperm.xlu1 %175, %v64_v4  }
   0x8   :  { %p196_p3 = por %p195_p2, %p194_p1 }
   0xa   :  { %p197_p4 = pnand %p196_p3, %p190_p0 }
  0x82   :  { %v87_v12 = vpop.permute.xlu1 %86 }
  0x83   :  { %vm91_vm0 = vcmp.eq.s32.totalorder %v84_v13, %v87_v12 }
  0x86   :  { %v90_v15 = vpop.permute.xlu1 %89 }
  0x87   :  { %vm92_vm1 = vcmp.eq.s32.totalorder %v84_v13, %v90_v15 }
  0x8f   :  { %v66_v5 = vpop.xlane.xlu0 %65 }
  0x90   :  { %v69_v6 = vsub.f32 %v61_v0, %v66_v5 }
  0x92   :  { %v71_v7 = vmul.f32 1.442695, %v69_v6  ;;  %v93_v17 = vsel %vm91_vm0, %v69_v6, 0.0 }
  0x93   :  { %v68_v8 = vpop.xlane.xlu0 %67 }
  0x94   :  { %177 = vpow2.f32 %v71_v7  ;;  %v70_v9 = vsub.f32 %v62_v3, %v68_v8 }
  0x96   :  { %v73_v10 = vmul.f32 1.442695, %v70_v9  ;;  %v94_v18 = vsel %vm92_vm1, %v70_v9, 0.0 }
  0x98   :  { %179 = vpow2.f32 %v73_v10 }
  0x9e   :  { %v178_v14 = vpop.eup %177 }
  0x9f   :  { %75 = vadd.xlane.f32.xlu0 %v178_v14 }
  0xa2   :  { %v180_v16 = vpop.eup %179 }
  0xa3   :  { %95 = vadd.xlane.f32.xlu0 %v93_v17  ;;  %77 = vadd.xlane.f32.xlu1 %v180_v16 }
  0xa7   :  { %97 = vadd.xlane.f32.xlu0 %v94_v18 }
 0x12c   :  { %v76_v19 = vpop.xlane.xlu0 %75 }
 0x12d   :  { %181 = vlog2.f32 %v76_v19 }
 0x130   :  { %v78_v20 = vpop.xlane.xlu1 %77  ;;  %v96_v22 = vpop.xlane.xlu0 %95 }
 0x131   :  { %183 = vlog2.f32 %v78_v20 }
 0x134   :  { %v98_v28 = vpop.xlane.xlu0 %97 }
 0x137   :  { %v182_v21 = vpop.eup %181 }
 0x138   :  { %v80_v23 = vmul.f32 0.6931472, %v182_v21 }
 0x13a   :  { %v99_v24 = vsub.f32 %v80_v23, %v96_v22 }
 0x13b   :  { %v184_v25 = vpop.eup %183 }
 0x13c   :  { %v101_v26 = vsub.f32 0.0, %v99_v24  ;;  %v82_v27 = vmul.f32 0.6931472, %v184_v25 }
 0x13e   :  { %v103_v29 = vmul.f32 1.442695, %v101_v26  ;;  %v100_v30 = vsub.f32 %v82_v27, %v98_v28 }
 0x140   :  { %185 = vpow2.f32 %v103_v29  ;;  %v102_v31 = vsub.f32 0.0, %v100_v30 }
 0x142   :  { %v105_v32 = vmul.f32 1.442695, %v102_v31 }
 0x144   :  { %187 = vpow2.f32 %v105_v32 }
 0x14a   :  { %v186_v33 = vpop.eup %185 }
 0x14b   :  { %v107_v34 = vsub.f32 1.0, %v186_v33 }
 0x14d   :  { %v109_v35 = vmax.f32 %v107_v34, 0.0 }
 0x14e   :  { %v188_v36 = vpop.eup %187 }
 0x14f   :  { %v111_v37 = vmul.f32 %v109_v35, %v109_v35  ;;  %v108_v38 = vsub.f32 1.0, %v188_v36 }
 0x151   :  { %v110_v39 = vmax.f32 %v108_v38, 0.0  ;;  %v113_v40 = vmul.f32 %v111_v37, %v99_v24 }
 0x153   :  { %v112_v41 = vmul.f32 %v110_v39, %v110_v39  ;;  %v129_v43 = vsel %vm128_vm2, %v113_v40, 0.0 }
 0x155   :  { %v114_v42 = vmul.f32 %v112_v41, %v100_v30 }
 0x157   :  { %v130_v44 = vsel %vm128_vm2, %v114_v42, 0.0 }
 0x158   :  { %v131_v45 = vadd.f32 %v130_v44, %v129_v43 }
 0x15a   :  { %132 = vadd.xlane.f32.xlu0 %v131_v45 }
 0x1e7   :  { %v133_v46 = vpop.xlane.xlu0 %132 }
 0x1e8   :  { %v134_v47 = vrot.slane %v133_v46, 4 }
 0x1ea   :  { %v135_v48 = vadd.f32 %v134_v47, %v133_v46 }
 0x1ec   :  { %v136_v49 = vrot.slane %v135_v48, 2 }
 0x1ee   :  { %v137_v50 = vadd.f32 %v136_v49, %v135_v48 }
 0x1f0   :  { %v138_v51 = vrot.slane %v137_v50, 1 }
 0x1f2   :  { %v139_v52 = vadd.f32 %v138_v51, %v137_v50 }
 0x1f4   :  { %170 = vpush %v139_v52 }
 0x225   :  { %s171_s17 = spop %170 }
 0x226   :  { %v141_v53 = vstv %s171_s17 }
 0x227   :  { %143 = vst [vmem:[#allocation2] sm:$0xff] %v141_v53 }
 0x228   :  { %200 = shalt.err (!%p197_p4)
}
 0x229   :  { %s201_s21 = scalar_lea.hbm %s256_s2, 128 }
 0x22a   :  { %p202_p5 = scmp.ne.s32.totalorder %s256_s2, %s201_s21  ;;  %p205_p6 = scmp.lt.u32.totalorder %s201_s21, %s256_s2 }
 0x22c   :  { %p207_p7 = pnand %p205_p6, %p202_p5 }
 0x22e   :  { %210 = shalt.err (!%p207_p7)
}
 0x22f   :  { %153 = dma.vmem_to_hbm [thread:$0]  %s151_s1, 128, %s256_s2, [#allocation3]  }
 0x230   :  { %211 = dma.done.wait [#allocation3], 128  }
 0x231   :  { %212 = vsyncadd [#allocation3], 4294967168 }
 0x232   :  { %157 = vsyncpa [#allocation3], 1 }

</bundles_post_ra>
